<compile_context>
chip_gen: v5e
topology: v5e:2x2
jax: 0.10.0
libtpu: 0.0.40
codegen_flags: <defaults>
</compile_context>

<pallas_src>
import jax
import jax.numpy as jnp
from jax.experimental import pallas as pl
from jax.experimental.pallas import tpu as pltpu

LANE = 128  # vreg lane width (last-dim granularity)


def _round_up(n, m):
    return (n + m - 1) // m * m


def _sublane(dtype):
    """Rows per vreg sublane tile for a given dtype (f32: 8, bf16: 16, i8: 32)."""
    return max(8, 32 // jnp.dtype(dtype).itemsize)


def _pad2d(a, rows, cols):
    r, c = a.shape
    if (r, c) == (rows, cols):
        return a
    return jnp.pad(a, ((0, rows - r), (0, cols - c)))


def _vmem_capacity_bytes():
    try:
        info = pltpu.get_tpu_info()
        cap = getattr(info, "vmem_capacity_bytes", None)
        if cap:
            return int(cap)
    except Exception:
        pass
    return 64 << 20  # conservative (v7x per-TensorCore)


def _choose_batch_tile(B, sublane, requested=None):
    """Return (tb, B_p) with B_p % tb == 0, minimizing padded rows."""
    B_s = _round_up(B, sublane)
    if requested is not None:
        tb = max(sublane, _round_up(requested, sublane))
        return tb, _round_up(B_s, tb)
    cap = 512
    if B_s >= 512:
        # v7x megacore: guarantee >=2 grid steps so the "parallel" batch axis
        # can be split across both TensorCores (keep the tile >= 256 for the
        # 256x256 MXU on v6e/v7x).
        cap = min(cap, max(256, _round_up((B_s + 1) // 2, sublane)))
    if B_s <= cap:
        return B_s, B_s  # single block, zero padding waste
    # Largest sublane-aligned tile <= cap; prefer the one minimizing padding.
    best_tb, best_bp = None, None
    for tb in range(cap - cap % sublane, sublane - 1, -sublane):
        bp = _round_up(B_s, tb)
        if best_bp is None or bp < best_bp:
            best_tb, best_bp = tb, bp
    return best_tb, best_bp


# --------------------------------------------------------------------------
# Kernels
# --------------------------------------------------------------------------
def mlp3_kernel(x_ref, w1_ref, b1_ref, w2_ref, b2_ref, w3_ref, b3_ref, o_ref):
    # Weights arrive in the MXU compute dtype (bf16 by default); x arrives f32
    # and is cast on the VPU here.  Matmuls accumulate in f32
    # (preferred_element_type); bias adds stay f32 on the VPU (safe on v5e).
    cdt = w1_ref.dtype
    x = x_ref[...].astype(cdt)
    h1 = jnp.dot(x, w1_ref[...], preferred_element_type=jnp.float32) + b1_ref[...]
    h2 = jnp.dot(h1.astype(cdt), w2_ref[...],
                 preferred_element_type=jnp.float32) + b2_ref[...]
    h3 = jnp.dot(h2.astype(cdt), w3_ref[...],
                 preferred_element_type=jnp.float32) + b3_ref[...]
    o_ref[...] = h3.astype(o_ref.dtype)


def folded_linear_kernel(x_ref, w_ref, b_ref, o_ref):
    x = x_ref[...].astype(w_ref.dtype)
    y = jnp.dot(x, w_ref[...], preferred_element_type=jnp.float32) + b_ref[...]
    o_ref[...] = y.astype(o_ref.dtype)


# --------------------------------------------------------------------------
# Parameter preparation (one-time: pad to lane multiples, cast weights)
# --------------------------------------------------------------------------
def prepare_params(params, *, compute_dtype=jnp.bfloat16, fold=False):
    """Pad feature dims to 128-lane multiples and cast weights to the MXU
    compute dtype.  Call ONCE and reuse the result across forwards.

    fold=True additionally collapses the activation-free 3-layer chain into a
    single (in, out) matmul (exact, done in f32) -- valid for inference with
    static params.
    """
    in_dim, hl1 = params["w1"].shape
    hl2 = params["w2"].shape[1]
    out_dim = params["w3"].shape[1]
    in_p = _round_up(in_dim, LANE)
    h1_p = _round_up(hl1, LANE)
    h2_p = _round_up(hl2, LANE)
    out_p = _round_up(out_dim, LANE)

    if fold:
        w = params["w1"] @ params["w2"] @ params["w3"]
        b = (params["b1"] @ params["w2"] + params["b2"]) @ params["w3"] + params["b3"]
        return dict(
            folded=True, in_dim=in_dim, out_dim=out_dim,
            w=_pad2d(w, in_p, out_p).astype(compute_dtype),
            b=_pad2d(b, 1, out_p).astype(jnp.float32),
        )

    return dict(
        folded=False, in_dim=in_dim, out_dim=out_dim,
        w1=_pad2d(params["w1"], in_p, h1_p).astype(compute_dtype),
        w2=_pad2d(params["w2"], h1_p, h2_p).astype(compute_dtype),
        w3=_pad2d(params["w3"], h2_p, out_p).astype(compute_dtype),
        b1=_pad2d(params["b1"], 1, h1_p).astype(jnp.float32),
        b2=_pad2d(params["b2"], 1, h2_p).astype(jnp.float32),
        b3=_pad2d(params["b3"], 1, out_p).astype(jnp.float32),
    )


# --------------------------------------------------------------------------
# Forward
# --------------------------------------------------------------------------
def model3layers_forward(x, prepared, *, batch_tile=None):
    """Pallas forward for model3layers (fc1 -> fc2 -> fc3, no activations).

    x:        (B, inputX) float32
    prepared: output of prepare_params().  Raw param dicts (w1/b1/...) are also
              accepted and prepared on the fly (slower per call).
    """
    if "folded" not in prepared:
        prepared = prepare_params(prepared)

    B, in_dim = x.shape
    assert in_dim == prepared["in_dim"], "input feature dim mismatch"
    out_dim = prepared["out_dim"]
    out_dtype = x.dtype

    # Batch tiling: dtype-aware sublane alignment, minimal padding waste.
    sublane = _sublane(x.dtype)
    tb, B_p = _choose_batch_tile(B, sublane, batch_tile)
    grid = (B_p // tb,)

    # Resident (constant index_map) weights/biases -> single-buffered.
    def const_spec(shape):
        return pl.BlockSpec(shape, lambda i: (0, 0), pipeline_mode=pl.Buffered(1))

    if prepared["folded"]:
        w, b = prepared["w"], prepared["b"]
        in_p, out_p = w.shape
        operands = (w, b)
        kernel = folded_linear_kernel
        flops = 2 * B_p * in_p * out_p
        intermediates = tb * out_p * 4  # f32 matmul result
    else:
        w1, b1 = prepared["w1"], prepared["b1"]
        w2, b2 = prepared["w2"], prepared["b2"]
        w3, b3 = prepared["w3"], prepared["b3"]
        in_p, h1_p = w1.shape
        h2_p = w2.shape[1]
        out_p = w3.shape[1]
        operands = (w1, b1, w2, b2, w3, b3)
        kernel = mlp3_kernel
        flops = 2 * B_p * (in_p * h1_p + h1_p * h2_p + h2_p * out_p)
        intermediates = tb * (h1_p + h2_p + out_p) * 4  # f32 h1/h2/h3

    weight_specs = [const_spec(a.shape) for a in operands]

    # Pad x (stays f32 -- cast happens inside the kernel).
    x_p = _pad2d(x, B_p, in_p)

    # VMEM residency budget -> explicit scoped-VMEM limit with headroom.
    resident = sum(int(a.size) * a.dtype.itemsize for a in operands)
    pipelined = 2 * tb * in_p * x.dtype.itemsize            # double-buffered x tile
    pipelined += 2 * tb * out_p * jnp.dtype(out_dtype).itemsize  # double-buffered out
    vmem_needed = resident + pipelined + intermediates
    vmem_cap = _vmem_capacity_bytes()
    vmem_limit = max(int(vmem_needed * 1.3) + (4 << 20), 32 << 20)
    vmem_limit = max(16 << 20, min(vmem_limit, int(vmem_cap * 0.85)))

    bytes_accessed = int(x_p.size) * x_p.dtype.itemsize + resident
    bytes_accessed += B_p * out_p * jnp.dtype(out_dtype).itemsize
    cost = pl.CostEstimate(flops=int(flops), transcendentals=0,
                           bytes_accessed=int(bytes_accessed))

    out_padded = pl.pallas_call(
        kernel,
        out_shape=jax.ShapeDtypeStruct((B_p, out_p), out_dtype),
        grid_spec=pltpu.PrefetchScalarGridSpec(
            num_scalar_prefetch=0,
            grid=grid,
            in_specs=[pl.BlockSpec((tb, in_p), lambda i: (i, 0))] + weight_specs,
            out_specs=pl.BlockSpec((tb, out_p), lambda i: (i, 0)),
        ),
        compiler_params=pltpu.CompilerParams(
            dimension_semantics=("parallel",),
            vmem_limit_bytes=int(vmem_limit),
        ),
        cost_estimate=cost,
    )(x_p, *operands)

    # Slice away batch / lane padding.
    return out_padded[:B, :out_dim]


# --------------------------------------------------------------------------
# Init + reference + self-test
# --------------------------------------------------------------------------
def init_params(key, inputX, hl1, hl2, outputY):
    """PyTorch nn.Linear-style init (uniform(-1/sqrt(fan_in), +)), stored (in, out)."""
    keys = jax.random.split(key, 6)

    def linear(kw, kb, fan_in, fan_out):
        bound = 1.0 / jnp.sqrt(fan_in)
        w = jax.random.uniform(kw, (fan_in, fan_out), jnp.float32, -bound, bound)
        b = jax.random.uniform(kb, (1, fan_out), jnp.float32, -bound, bound)
        return w, b

    w1, b1 = linear(keys[0], keys[1], inputX, hl1)
    w2, b2 = linear(keys[2], keys[3], hl1, hl2)
    w3, b3 = linear(keys[4], keys[5], hl2, outputY)
    return dict(w1=w1, b1=b1, w2=w2, b2=b2, w3=w3, b3=b3)


def _reference(x, p):
    return ((x @ p["w1"] + p["b1"]) @ p["w2"] + p["b2"]) @ p["w3"] + p["b3"]


if __name__ == "__main__":
    # Shapes consistent with model3layers(inputX=32, hl1=64, hl2=64, outputY=16)
    B, inputX, hl1, hl2, outputY = 8, 32, 64, 64, 16

    key = jax.random.PRNGKey(0)
    kx, kp = jax.random.split(key)
    x = jax.random.normal(kx, (B, inputX), jnp.float32)
    params = init_params(kp, inputX, hl1, hl2, outputY)
    ref = _reference(x, params)

    # 1) Exact path: f32 weights in the kernel -> tight tolerance.
    prep_f32 = prepare_params(params, compute_dtype=jnp.float32)
    out_f32 = jax.block_until_ready(model3layers_forward(x, prep_f32))
    assert out_f32.shape == (B, outputY)
    assert jnp.allclose(out_f32, ref, atol=1e-4, rtol=1e-4)

    # 2) Default fast path: bf16 weights/activations on the MXU, f32 accumulate.
    prep_bf16 = prepare_params(params)  # compute_dtype=bf16
    out_bf16 = jax.block_until_ready(model3layers_forward(x, prep_bf16))
    assert out_bf16.shape == (B, outputY)
    assert jnp.allclose(out_bf16, ref, atol=5e-2, rtol=5e-2)

    # 3) Multi-step batch grid (exercises the pipelined / parallel batch axis).
    B2 = 32
    x2 = jax.random.normal(jax.random.PRNGKey(1), (B2, inputX), jnp.float32)
    ref2 = _reference(x2, params)
    out2 = jax.block_until_ready(
        model3layers_forward(x2, prep_bf16, batch_tile=8))
    assert out2.shape == (B2, outputY)
    assert jnp.allclose(out2, ref2, atol=5e-2, rtol=5e-2)

    # 4) Algebraically folded inference path (exact fold in f32 -> one matmul).
    prep_fold = prepare_params(params, compute_dtype=jnp.float32, fold=True)
    out_fold = jax.block_until_ready(model3layers_forward(x, prep_fold))
    assert out_fold.shape == (B, outputY)
    assert jnp.allclose(out_fold, ref, atol=1e-4, rtol=1e-4)

    print("KERNEL_OK")
</pallas_src>

<mosaic_0001>
module attributes {stable_mosaic.version = 11 : i64} {
  func.func @mlp3_kernel(%arg0: i32, %arg1: memref<8x128xf32, #tpu.memory_space<vmem>>, %arg2: memref<128x128xf32, #tpu.memory_space<vmem>>, %arg3: memref<1x128xf32, #tpu.memory_space<vmem>>, %arg4: memref<128x128xf32, #tpu.memory_space<vmem>>, %arg5: memref<1x128xf32, #tpu.memory_space<vmem>>, %arg6: memref<128x128xf32, #tpu.memory_space<vmem>>, %arg7: memref<1x128xf32, #tpu.memory_space<vmem>>, %arg8: memref<8x128xf32, #tpu.memory_space<vmem>>) attributes {dimension_semantics = [#tpu.dimension_semantics<parallel>], iteration_bounds = array<i64: 1>, scalar_prefetch = 0 : i64, scratch_operands = 0 : i64, tpu.core_type = #tpu.core_type<tc>, window_params = [{transform_indices = @transform_0, window_bounds = array<i64: 8, 128>}, {pipeline_mode = #tpu.pipeline_mode<synchronous>, transform_indices = @transform_1, window_bounds = array<i64: 128, 128>}, {pipeline_mode = #tpu.pipeline_mode<synchronous>, transform_indices = @transform_2, window_bounds = array<i64: 1, 128>}, {pipeline_mode = #tpu.pipeline_mode<synchronous>, transform_indices = @transform_3, window_bounds = array<i64: 128, 128>}, {pipeline_mode = #tpu.pipeline_mode<synchronous>, transform_indices = @transform_4, window_bounds = array<i64: 1, 128>}, {pipeline_mode = #tpu.pipeline_mode<synchronous>, transform_indices = @transform_5, window_bounds = array<i64: 128, 128>}, {pipeline_mode = #tpu.pipeline_mode<synchronous>, transform_indices = @transform_6, window_bounds = array<i64: 1, 128>}, {transform_indices = @transform_7, window_bounds = array<i64: 8, 128>}]} {
    %c0 = arith.constant 0 : index
    %c0_0 = arith.constant 0 : index
    %0 = vector.load %arg1[%c0, %c0_0] : memref<8x128xf32, #tpu.memory_space<vmem>>, vector<8x128xf32>
    %c0_1 = arith.constant 0 : index
    %c0_2 = arith.constant 0 : index
    %1 = vector.load %arg2[%c0_1, %c0_2] : memref<128x128xf32, #tpu.memory_space<vmem>>, vector<128x128xf32>
    %cst = arith.constant dense<0.000000e+00> : vector<8x128xf32>
    %2 = tpu.matmul %0, %1, %cst {dimension_numbers = #tpu.dot_dimension_numbers<[1], [0], [0], [1], [0, 0, 1, 1], [], []>} : vector<8x128xf32>, vector<128x128xf32>, vector<8x128xf32> -> vector<8x128xf32>
    %c0_3 = arith.constant 0 : index
    %c0_4 = arith.constant 0 : index
    %3 = vector.load %arg3[%c0_3, %c0_4] : memref<1x128xf32, #tpu.memory_space<vmem>>, vector<1x128xf32>
    %4 = vector.broadcast %3 : vector<1x128xf32> to vector<8x128xf32>
    %5 = arith.addf %2, %4 : vector<8x128xf32>
    %c0_5 = arith.constant 0 : index
    %c0_6 = arith.constant 0 : index
    %6 = vector.load %arg4[%c0_5, %c0_6] : memref<128x128xf32, #tpu.memory_space<vmem>>, vector<128x128xf32>
    %cst_7 = arith.constant dense<0.000000e+00> : vector<8x128xf32>
    %7 = tpu.matmul %5, %6, %cst_7 {dimension_numbers = #tpu.dot_dimension_numbers<[1], [0], [0], [1], [0, 0, 1, 1], [], []>} : vector<8x128xf32>, vector<128x128xf32>, vector<8x128xf32> -> vector<8x128xf32>
    %c0_8 = arith.constant 0 : index
    %c0_9 = arith.constant 0 : index
    %8 = vector.load %arg5[%c0_8, %c0_9] : memref<1x128xf32, #tpu.memory_space<vmem>>, vector<1x128xf32>
    %9 = vector.broadcast %8 : vector<1x128xf32> to vector<8x128xf32>
    %10 = arith.addf %7, %9 : vector<8x128xf32>
    %c0_10 = arith.constant 0 : index
    %c0_11 = arith.constant 0 : index
    %11 = vector.load %arg6[%c0_10, %c0_11] : memref<128x128xf32, #tpu.memory_space<vmem>>, vector<128x128xf32>
    %cst_12 = arith.constant dense<0.000000e+00> : vector<8x128xf32>
    %12 = tpu.matmul %10, %11, %cst_12 {dimension_numbers = #tpu.dot_dimension_numbers<[1], [0], [0], [1], [0, 0, 1, 1], [], []>} : vector<8x128xf32>, vector<128x128xf32>, vector<8x128xf32> -> vector<8x128xf32>
    %c0_13 = arith.constant 0 : index
    %c0_14 = arith.constant 0 : index
    %13 = vector.load %arg7[%c0_13, %c0_14] : memref<1x128xf32, #tpu.memory_space<vmem>>, vector<1x128xf32>
    %14 = vector.broadcast %13 : vector<1x128xf32> to vector<8x128xf32>
    %15 = arith.addf %12, %14 : vector<8x128xf32>
    %c0_15 = arith.constant 0 : index
    %c0_16 = arith.constant 0 : index
    %16 = vector.load %arg8[%c0_15, %c0_16] : memref<8x128xf32, #tpu.memory_space<vmem>>, vector<8x128xf32>
    tpu.vector_store %arg8[%c0_15, %c0_16], %15 {strides = array<i32>} : memref<8x128xf32, #tpu.memory_space<vmem>>, vector<8x128xf32>,
    return
  }
  func.func @transform_0(%arg0: i32) -> (i32, i32) {
    %c0_i32 = arith.constant 0 : i32
    %c0_i32_0 = arith.constant 0 : i32
    return %arg0, %c0_i32 : i32, i32
  }
  func.func @transform_1(%arg0: i32) -> (i32, i32) {
    %c0_i32 = arith.constant 0 : i32
    %c0_i32_0 = arith.constant 0 : i32
    %c0_i32_1 = arith.constant 0 : i32
    return %c0_i32, %c0_i32_0 : i32, i32
  }
  func.func @transform_2(%arg0: i32) -> (i32, i32) {
    %c0_i32 = arith.constant 0 : i32
    %c0_i32_0 = arith.constant 0 : i32
    %c0_i32_1 = arith.constant 0 : i32
    return %c0_i32, %c0_i32_0 : i32, i32
  }
  func.func @transform_3(%arg0: i32) -> (i32, i32) {
    %c0_i32 = arith.constant 0 : i32
    %c0_i32_0 = arith.constant 0 : i32
    %c0_i32_1 = arith.constant 0 : i32
    return %c0_i32, %c0_i32_0 : i32, i32
  }
  func.func @transform_4(%arg0: i32) -> (i32, i32) {
    %c0_i32 = arith.constant 0 : i32
    %c0_i32_0 = arith.constant 0 : i32
    %c0_i32_1 = arith.constant 0 : i32
    return %c0_i32, %c0_i32_0 : i32, i32
  }
  func.func @transform_5(%arg0: i32) -> (i32, i32) {
    %c0_i32 = arith.constant 0 : i32
    %c0_i32_0 = arith.constant 0 : i32
    %c0_i32_1 = arith.constant 0 : i32
    return %c0_i32, %c0_i32_0 : i32, i32
  }
  func.func @transform_6(%arg0: i32) -> (i32, i32) {
    %c0_i32 = arith.constant 0 : i32
    %c0_i32_0 = arith.constant 0 : i32
    %c0_i32_1 = arith.constant 0 : i32
    return %c0_i32, %c0_i32_0 : i32, i32
  }
  func.func @transform_7(%arg0: i32) -> (i32, i32) {
    %c0_i32 = arith.constant 0 : i32
    %c0_i32_0 = arith.constant 0 : i32
    return %arg0, %c0_i32 : i32, i32
  }
}

</mosaic_0001>

<bundles_post_ra>
// kernel: tpu_custom_call.1
= control target key start
LH: loop header
LB: loop body
LE: loop exit
PB: predicated region body
PF: predicated region fallthrough
CT: control target
= control target key end

     0   :  { %12 = vsyncpa [#allocation3], 0  ;;  %s438_s0 = inlined_call_operand.hbm [shape: f32[8,128], index: 0, kind: input, shape index: {}]   ;;  %s439_s1 = inlined_call_operand.hbm [shape: f32[128,128], index: 1, kind: input, shape index: {}]   ;;  %s440_s2 = inlined_call_operand.vmem [shape: f32[1,128], index: 2, kind: input, shape index: {}]   ;;  %s441_s3 = inlined_call_operand.hbm [shape: f32[128,128], index: 3, kind: input, shape index: {}]   ;;  %s442_s4 = inlined_call_operand.vmem [shape: f32[1,128], index: 4, kind: input, shape index: {}]   ;;  %s443_s5 = inlined_call_operand.hbm [shape: f32[128,128], index: 5, kind: input, shape index: {}]   ;;  %s444_s6 = inlined_call_operand.vmem [shape: f32[1,128], index: 6, kind: input, shape index: {}]   ;;  %s445_s7 = inlined_call_operand.hbm [shape: f32[8,128], index: 7, kind: output, shape index: {}]  }
   0x1   :  { %13 = vsyncpa [#allocation6], 0 }
   0x2   :  { %14 = vsyncpa [#allocation9], 0  ;;  %s31_s26 = sshll.u32 %s439_s1, 4  ;;  %s32_s26 = int_to_ptr.hbm [resolvable:$true] %s31_s26 }
   0x3   :  { %15 = vsyncpa [#allocation4], 0  ;;  %s367_s27 = smov [#allocation5]   ;;  %s21_s8 = sshll.u32 %s438_s0, 4  ;;  %s22_s8 = int_to_ptr.hbm [resolvable:$true] %s21_s8 }
   0x4   :  { %s33_s28 = sshll.u32 %s367_s27, 4  ;;  %s368_s9 = smov 128   ;;  %s34_s28 = int_to_ptr.vmem [resolvable:$true] %s33_s28 }
   0x5   :  { %s369_s10 = smov 8   ;;  %s370_s11 = smov [#allocation2]  }
   0x6   :  { %39 = dma.hbm_to_vmem [thread:$0]  %s32_s26, 2048, %s34_s28, [#allocation6], %s368_s9, %s368_s9, %s369_s10  }
   0x7   :  { %s23_s12 = sshll.u32 %s370_s11, 4  ;;  %s46_s15 = sshll.u32 %s441_s3, 4  ;;  %s24_s12 = int_to_ptr.vmem [resolvable:$true] %s23_s12  ;;  %s47_s15 = int_to_ptr.hbm [resolvable:$true] %s46_s15 }
   0x8   :  { %26 = dma.hbm_to_vmem [thread:$0]  %s22_s8, 128, %s24_s12, [#allocation3]  }
   0x9   :  { %s61_s17 = sshll.u32 %s443_s5, 4  ;;  %s371_s18 = smov [#allocation7]   ;;  %s62_s17 = int_to_ptr.hbm [resolvable:$true] %s61_s17 }
   0xa   :  { %s48_s19 = sshll.u32 %s371_s18, 4  ;;  %s372_s0 = smov [#allocation8]   ;;  %s49_s19 = int_to_ptr.vmem [resolvable:$true] %s48_s19 }
   0xb   :  { %54 = dma.hbm_to_vmem [thread:$0]  %s47_s15, 2048, %s49_s19, [#allocation6], %s368_s9, %s368_s9, %s369_s10  }
   0xc   :  { %s63_s20 = sshll.u32 %s372_s0, 4  ;;  %s64_s20 = int_to_ptr.vmem [resolvable:$true] %s63_s20 }
   0xd   :  { %69 = dma.hbm_to_vmem [thread:$0]  %s62_s17, 2048, %s64_s20, [#allocation9], %s368_s9, %s368_s9, %s369_s10  }
   0xe   :  { %359 = dma.done.wait [#allocation3], 128  }
   0xf   :  { %360 = vsyncadd [#allocation3], 4294967168 }
  0x10   :  { %361 = dma.done.wait [#allocation6], 4096  }
  0x11   :  { %362 = vsyncadd [#allocation6], 4294963200 }
  0x12   :  { %363 = dma.done.wait [#allocation9], 2048  }
  0x13   :  { %364 = vsyncadd [#allocation9], 4294965248  ;;  %v104_v0 = vld [vmem:[#allocation5 + $0x78] sm:$0xff]  ;;  %v103_v1 = vld [vmem:[#allocation5 + $0x70] sm:$0xff]  ;;  %s217_s28 = sshll.u32 %s445_s7, 4  ;;  %s218_s28 = int_to_ptr.hbm [resolvable:$true] %s217_s28 }
  0x14   :  { %109 = vmatpush.msra.mxu0 %v104_v0  ;;  %v102_v2 = vld [vmem:[#allocation5 + $0x68] sm:$0xff]  ;;  %v101_v3 = vld [vmem:[#allocation5 + $0x60] sm:$0xff]  ;;  %v144_v4 = vld [vmem:[#allocation7 + $0x78] sm:$0xff] }
  0x15   :  { %v100_v5 = vld [vmem:[#allocation5 + $0x58] sm:$0xff]  ;;  %149 = vmatpush.msra.mxu1 %v144_v4  ;;  %v143_v6 = vld [vmem:[#allocation7 + $0x70] sm:$0xff]  ;;  %v142_v7 = vld [vmem:[#allocation7 + $0x68] sm:$0xff] }
  0x16   :  { %110 = vmatpush.msra.mxu0 %v103_v1  ;;  %v99_v8 = vld [vmem:[#allocation5 + $0x50] sm:$0xff]  ;;  %v141_v9 = vld [vmem:[#allocation7 + $0x60] sm:$0xff]  ;;  %v98_v10 = vld [vmem:[#allocation5 + $0x48] sm:$0xff] }
  0x17   :  { %150 = vmatpush.msra.mxu1 %v143_v6  ;;  %v140_v11 = vld [vmem:[#allocation7 + $0x58] sm:$0xff]  ;;  %v97_v12 = vld [vmem:[#allocation5 + $0x40] sm:$0xff]  ;;  %v139_v13 = vld [vmem:[#allocation7 + $0x50] sm:$0xff] }
  0x18   :  { %111 = vmatpush.msra.mxu0 %v102_v2  ;;  %v96_v14 = vld [vmem:[#allocation5 + $0x38] sm:$0xff]  ;;  %v138_v15 = vld [vmem:[#allocation7 + $0x48] sm:$0xff]  ;;  %v95_v16 = vld [vmem:[#allocation5 + $0x30] sm:$0xff] }
  0x19   :  { %151 = vmatpush.msra.mxu1 %v142_v7  ;;  %v137_v17 = vld [vmem:[#allocation7 + $0x40] sm:$0xff]  ;;  %v94_v18 = vld [vmem:[#allocation5 + $0x28] sm:$0xff]  ;;  %v136_v19 = vld [vmem:[#allocation7 + $0x38] sm:$0xff] }
  0x1a   :  { %112 = vmatpush.msra.mxu0 %v101_v3  ;;  %v93_v20 = vld [vmem:[#allocation5 + $0x20] sm:$0xff]  ;;  %v135_v21 = vld [vmem:[#allocation7 + $0x30] sm:$0xff]  ;;  %v92_v22 = vld [vmem:[#allocation5 + $0x18] sm:$0xff] }
  0x1b   :  { %152 = vmatpush.msra.mxu1 %v141_v9  ;;  %v134_v23 = vld [vmem:[#allocation7 + $0x28] sm:$0xff]  ;;  %v91_v24 = vld [vmem:[#allocation5 + $0x10] sm:$0xff]  ;;  %v133_v25 = vld [vmem:[#allocation7 + $0x20] sm:$0xff] }
  0x1c   :  { %113 = vmatpush.msra.mxu0 %v100_v5  ;;  %v90_v26 = vld [vmem:[#allocation5 + $0x8] sm:$0xff]  ;;  %v132_v27 = vld [vmem:[#allocation7 + $0x18] sm:$0xff]  ;;  %v89_v28 = vld [vmem:[#allocation5] sm:$0xff] }
  0x1d   :  { %153 = vmatpush.msra.mxu1 %v140_v11  ;;  %v88_v29 = vld [vmem:[#allocation2] sm:$0xff]  ;;  %v131_v30 = vld [vmem:[#allocation7 + $0x10] sm:$0xff]  ;;  %v130_v31 = vld [vmem:[#allocation7 + $0x8] sm:$0xff] }
  0x1e   :  { %114 = vmatpush.msra.mxu0 %v99_v8  ;;  %v129_v32 = vld [vmem:[#allocation7] sm:$0xff]  ;;  %v184_v33 = vld [vmem:[#allocation8 + $0x78] sm:$0xff]  ;;  %v183_v34 = vld [vmem:[#allocation8 + $0x70] sm:$0xff] }
  0x1f   :  { %154 = vmatpush.msra.mxu1 %v139_v13  ;;  %189 = vmatpush.msra.mxu2 %v184_v33  ;;  %v182_v35 = vld [vmem:[#allocation8 + $0x68] sm:$0xff]  ;;  %v181_v36 = vld [vmem:[#allocation8 + $0x60] sm:$0xff]  ;;  %v180_v37 = vld [vmem:[#allocation8 + $0x58] sm:$0xff] }
  0x20   :  { %115 = vmatpush.msra.mxu0 %v98_v10  ;;  %v179_v38 = vld [vmem:[#allocation8 + $0x50] sm:$0xff]  ;;  %v178_v39 = vld [vmem:[#allocation8 + $0x48] sm:$0xff]  ;;  %v177_v40 = vld [vmem:[#allocation8 + $0x40] sm:$0xff] }
  0x21   :  { %155 = vmatpush.msra.mxu1 %v138_v15  ;;  %190 = vmatpush.msra.mxu2 %v183_v34  ;;  %v176_v41 = vld [vmem:[#allocation8 + $0x38] sm:$0xff]  ;;  %v175_v42 = vld [vmem:[#allocation8 + $0x30] sm:$0xff]  ;;  %v174_v43 = vld [vmem:[#allocation8 + $0x28] sm:$0xff] }
  0x22   :  { %116 = vmatpush.msra.mxu0 %v97_v12  ;;  %v173_v44 = vld [vmem:[#allocation8 + $0x20] sm:$0xff]  ;;  %v172_v45 = vld [vmem:[#allocation8 + $0x18] sm:$0xff]  ;;  %v171_v46 = vld [vmem:[#allocation8 + $0x10] sm:$0xff] }
  0x23   :  { %156 = vmatpush.msra.mxu1 %v137_v17  ;;  %191 = vmatpush.msra.mxu2 %v182_v35  ;;  %v236_v47 = vld [vmem:[%s440_s2] ss:$0 sm:$0xff]  ;;  %v170_v50 = vld [vmem:[#allocation8 + $0x8] sm:$0xff]  ;;  %v169_v51 = vld [vmem:[#allocation8] sm:$0xff]  ;;  %s373_s2 = smov [#allocation10]  }
  0x24   :  { %117 = vmatpush.msra.mxu0 %v96_v14  ;;  %v237_v52 = vld [vmem:[%s442_s4] ss:$0 sm:$0xff]  ;;  %s215_s25 = sshll.u32 %s373_s2, 4  ;;  %s216_s25 = int_to_ptr.vmem [resolvable:$true] %s215_s25 }
  0x25   :  { %157 = vmatpush.msra.mxu1 %v136_v19  ;;  %192 = vmatpush.msra.mxu2 %v181_v36  ;;  %v238_v55 = vld [vmem:[%s444_s6] ss:$0 sm:$0xff] }
  0x26   :  { %118 = vmatpush.msra.mxu0 %v95_v16 }
  0x27   :  { %158 = vmatpush.msra.mxu1 %v135_v21  ;;  %193 = vmatpush.msra.mxu2 %v180_v37 }
  0x28   :  { %119 = vmatpush.msra.mxu0 %v94_v18 }
  0x29   :  { %159 = vmatpush.msra.mxu1 %v134_v23  ;;  %194 = vmatpush.msra.mxu2 %v179_v38 }
  0x2a   :  { %120 = vmatpush.msra.mxu0 %v93_v20 }
  0x2b   :  { %160 = vmatpush.msra.mxu1 %v133_v25  ;;  %195 = vmatpush.msra.mxu2 %v178_v39 }
  0x2c   :  { %121 = vmatpush.msra.mxu0 %v92_v22 }
  0x2d   :  { %161 = vmatpush.msra.mxu1 %v132_v27  ;;  %196 = vmatpush.msra.mxu2 %v177_v40 }
  0x2e   :  { %122 = vmatpush.msra.mxu0 %v91_v24 }
  0x2f   :  { %162 = vmatpush.msra.mxu1 %v131_v30  ;;  %197 = vmatpush.msra.mxu2 %v176_v41 }
  0x30   :  { %123 = vmatpush.msra.mxu0 %v90_v26 }
  0x31   :  { %163 = vmatpush.msra.mxu1 %v130_v31  ;;  %198 = vmatpush.msra.mxu2 %v175_v42 }
  0x32   :  { %124 = vmatpush.msra.mxu0 %v89_v28 }
  0x33   :  { %125 = vmatmul.f32.vlgmr.msra.gmra.mxu0 %v88_v29  ;;  %164 = vmatpush.msra.mxu1 %v129_v32 }
  0x34   :  { %199 = vmatpush.msra.mxu2 %v174_v43 }
  0x36   :  { %200 = vmatpush.msra.mxu2 %v173_v44 }
  0x38   :  { %201 = vmatpush.msra.mxu2 %v172_v45 }
  0x3a   :  { %202 = vmatpush.msra.mxu2 %v171_v46 }
  0x3c   :  { %203 = vmatpush.msra.mxu2 %v170_v50 }
  0x3e   :  { %204 = vmatpush.msra.mxu2 %v169_v51 }
  0xb0   :  { %v126_v48 = vpop.f32.mrf.mxu0 }
  0xb1   :  { %v127_v49 = vadd.f32 %v236_v47, %v126_v48 }
  0xb3   :  { %165 = vmatmul.f32.vlgmr.msra.gmra.mxu1 %v127_v49 }
 0x130   :  { %v166_v53 = vpop.f32.mrf.mxu1 }
 0x131   :  { %v167_v54 = vadd.f32 %v237_v52, %v166_v53 }
 0x133   :  { %205 = vmatmul.f32.vlgmr.msra.gmra.mxu2 %v167_v54 }
 0x1b6   :  { %v206_v56 = vpop.f32.mrf.mxu2 }
 0x1b7   :  { %v207_v57 = vadd.f32 %v238_v55, %v206_v56 }
 0x1b9   :  { %209 = vst [vmem:[#allocation10] sm:$0xff] %v207_v57 }
 0x1ba   :  { %220 = dma.vmem_to_hbm [thread:$0]  %s216_s25, 128, %s218_s28, [#allocation4]  }
 0x1bb   :  { %365 = dma.done.wait [#allocation4], 128  }
 0x1bc   :  { %366 = vsyncadd [#allocation4], 4294967168 }
 0x1bd   :  { %225 = vsyncpa [#allocation3], 1 }
 0x1be   :  { %226 = vsyncpa [#allocation6], 1 }
 0x1bf   :  { %227 = vsyncpa [#allocation9], 1 }
 0x1c0   :  { %228 = vsyncpa [#allocation4], 1 }

</bundles_post_ra>
